<compile_context>
chip_gen: v6e
topology: v6e:2x2x1
jax: 0.10.0
libtpu: 0.0.40
codegen_flags: <defaults>
</compile_context>

<pallas_src>
import functools

import jax
import jax.numpy as jnp
from jax.experimental import pallas as pl
from jax.experimental.pallas import tpu as pltpu


def _fused_mlp_kernel(*refs):
    """refs = (xT_ref, w1_ref, b1_ref, ..., wK_ref, bK_ref, out_ref).

    xT_ref : (F0, tile_n)   input tile, batch along the lane axis.
    hidden : w_i (Fi, Fi-1), b_i (Fi, 1)   -> h = relu(W @ h + b)   (MXU + VPU)
    output : w_K (F_last, 1), b_K (1, 1)   -> y = sum_f(h * w) + b  (VPU + XLU)
    out_ref: (1, tile_n)
    """
    xt_ref, out_ref = refs[0], refs[-1]
    wb = refs[1:-1]
    n_layers = len(wb) // 2

    h = xt_ref[...]                                        # (F0, tile_n) f32
    for i in range(n_layers - 1):
        w = wb[2 * i][...]                                 # (Fout, Fin)
        b = wb[2 * i + 1][...]                             # (Fout, 1)
        h = jnp.dot(w, h, preferred_element_type=jnp.float32) + b
        h = jnp.maximum(h, 0.0)                            # ReLU

    # Output layer: Linear(F_last, 1), no activation. VPU mul + sublane reduce
    # avoids a 1-wide MXU matmul and produces a lane-dense (1, tile_n) row.
    w_out = wb[-2][...]                                    # (F_last, 1)
    b_out = wb[-1][...]                                    # (1, 1)
    y = jnp.sum(h * w_out, axis=0, keepdims=True) + b_out  # (1, tile_n)
    out_ref[...] = y.astype(out_ref.dtype)


def _round_up(v: int, m: int) -> int:
    return ((v + m - 1) // m) * m


@functools.partial(jax.jit, static_argnames=("tile_n",))
def mlp_forward(x, params, *, tile_n: int = 512):
    """x: (N, F0) float32. params: see init_mlp_params. Returns (N, 1) float32."""
    n, f0 = x.shape
    assert tile_n % 128 == 0, "tile_n must be a multiple of 128 (lane width)"
    tile = min(tile_n, _round_up(n, 128))      # lane-dense tile, multiple of 128
    npad = _round_up(n, tile)

    # Transposed orientation: batch along the lane axis; pad lanes to the tile grid.
    xt = x.T                                   # (F0, N)
    if npad != n:
        xt = jnp.pad(xt, ((0, 0), (0, npad - n)))

    flat = []
    in_specs = [pl.BlockSpec((f0, tile), lambda i: (0, i))]
    for (w, b) in params:
        flat += [w, b]
        # Constant index_maps -> weights/biases stay VMEM-resident across grid steps.
        in_specs.append(pl.BlockSpec(w.shape, lambda i: (0, 0)))
        in_specs.append(pl.BlockSpec(b.shape, lambda i: (0, 0)))

    out_t = pl.pallas_call(
        _fused_mlp_kernel,
        out_shape=jax.ShapeDtypeStruct((1, npad), x.dtype),
        grid=(npad // tile,),
        in_specs=in_specs,
        out_specs=pl.BlockSpec((1, tile), lambda i: (0, i)),
        compiler_params=pltpu.CompilerParams(
            dimension_semantics=("parallel",)),   # megacore sharding on v7x
    )(xt, *flat)

    return out_t[:, :n].T                      # (N, 1), matches torch layout


def init_mlp_params(key, d_hidden):
    """PyTorch-like init: U(-1/sqrt(fan_in), 1/sqrt(fan_in)) for W and b.

    Kernel-ready layout:
      hidden layer i : W (fan_out, fan_in)  [torch layout, used as W @ h],  b (fan_out, 1)
      output layer   : W (fan_in, 1)        [column, for VPU mul + reduce], b (1, 1)
    """
    dims = list(d_hidden) + [1]                # output_layer: Linear(d_hidden[-1], 1)
    params = []
    for i in range(1, len(dims)):
        fan_in, fan_out = dims[i - 1], dims[i]
        key, kw, kb = jax.random.split(key, 3)
        bound = 1.0 / float(fan_in) ** 0.5
        if i == len(dims) - 1:
            w = jax.random.uniform(kw, (fan_in, fan_out), jnp.float32, -bound, bound)
        else:
            w = jax.random.uniform(kw, (fan_out, fan_in), jnp.float32, -bound, bound)
        b = jax.random.uniform(kb, (fan_out, 1), jnp.float32, -bound, bound)
        params.append((w, b))
    return params


def mlp_reference(x, params):
    """Pure-JAX reference with identical semantics (dropout p=0, no batchnorm)."""
    h = x
    n_layers = len(params)
    for i, (w, b) in enumerate(params):
        if i < n_layers - 1:
            h = jnp.maximum(h @ w.T + b.T, 0.0)   # w: (fout, fin), b: (fout, 1)
        else:
            h = h @ w + b.T                        # w: (fin, 1),   b: (1, 1)
    return h


if __name__ == "__main__":
    d_hidden = [32, 64, 32]
    batch = 300   # not a multiple of the tile: exercises padding + a multi-step grid

    key = jax.random.PRNGKey(0)
    key, kx = jax.random.split(key)
    x = jax.random.normal(kx, (batch, d_hidden[0]), jnp.float32)
    params = init_mlp_params(key, d_hidden)

    # tile_n=128 keeps the demo small while exercising a 3-step "parallel" grid;
    # production default is tile_n=512 (>=512-row tiles ~85% of HBM roofline).
    out = mlp_forward(x, params, tile_n=128)
    out = jax.block_until_ready(out)

    ref = mlp_reference(x, params)
    assert out.shape == (batch, 1), out.shape
    assert jnp.allclose(out, ref, atol=1e-5, rtol=1e-5), float(
        jnp.max(jnp.abs(out - ref)))

    print("KERNEL_OK")
</pallas_src>

<mosaic_0001>
module attributes {stable_mosaic.version = 11 : i64} {
  func.func @_fused_mlp_kernel(%arg0: i32, %arg1: memref<32x128xf32, #tpu.memory_space<vmem>>, %arg2: memref<64x32xf32, #tpu.memory_space<vmem>>, %arg3: memref<64x1xf32, #tpu.memory_space<vmem>>, %arg4: memref<32x64xf32, #tpu.memory_space<vmem>>, %arg5: memref<32x1xf32, #tpu.memory_space<vmem>>, %arg6: memref<32x1xf32, #tpu.memory_space<vmem>>, %arg7: memref<1x1xf32, #tpu.memory_space<vmem>>, %arg8: memref<1x128xf32, #tpu.memory_space<vmem>>) attributes {dimension_semantics = [#tpu.dimension_semantics<parallel>], iteration_bounds = array<i64: 3>, scalar_prefetch = 0 : i64, scratch_operands = 0 : i64, tpu.core_type = #tpu.core_type<tc>, window_params = [{transform_indices = @transform_0, window_bounds = array<i64: 32, 128>}, {pipeline_mode = #tpu.pipeline_mode<synchronous>, transform_indices = @transform_1, window_bounds = array<i64: 64, 32>}, {pipeline_mode = #tpu.pipeline_mode<synchronous>, transform_indices = @transform_2, window_bounds = array<i64: 64, 1>}, {pipeline_mode = #tpu.pipeline_mode<synchronous>, transform_indices = @transform_3, window_bounds = array<i64: 32, 64>}, {pipeline_mode = #tpu.pipeline_mode<synchronous>, transform_indices = @transform_4, window_bounds = array<i64: 32, 1>}, {pipeline_mode = #tpu.pipeline_mode<synchronous>, transform_indices = @transform_5, window_bounds = array<i64: 32, 1>}, {pipeline_mode = #tpu.pipeline_mode<synchronous>, transform_indices = @transform_6, window_bounds = array<i64: 1, 1>}, {transform_indices = @transform_7, window_bounds = array<i64: 1, 128>}]} {
    %c0 = arith.constant 0 : index
    %c0_0 = arith.constant 0 : index
    %0 = vector.load %arg1[%c0, %c0_0] : memref<32x128xf32, #tpu.memory_space<vmem>>, vector<32x128xf32>
    %c0_1 = arith.constant 0 : index
    %c0_2 = arith.constant 0 : index
    %1 = vector.load %arg2[%c0_1, %c0_2] : memref<64x32xf32, #tpu.memory_space<vmem>>, vector<64x32xf32>
    %c0_3 = arith.constant 0 : index
    %c0_4 = arith.constant 0 : index
    %2 = vector.load %arg3[%c0_3, %c0_4] : memref<64x1xf32, #tpu.memory_space<vmem>>, vector<64x1xf32>
    %cst = arith.constant dense<0.000000e+00> : vector<64x128xf32>
    %3 = tpu.matmul %1, %0, %cst {dimension_numbers = #tpu.dot_dimension_numbers<[1], [0], [0], [1], [0, 0, 1, 1], [], []>} : vector<64x32xf32>, vector<32x128xf32>, vector<64x128xf32> -> vector<64x128xf32>
    %4 = vector.broadcast %2 : vector<64x1xf32> to vector<64x128xf32>
    %5 = arith.addf %3, %4 : vector<64x128xf32>
    %cst_5 = arith.constant 0.000000e+00 : f32
    %6 = vector.broadcast %cst_5 : f32 to vector<64x128xf32>
    %7 = arith.maximumf %5, %6 : vector<64x128xf32>
    %c0_6 = arith.constant 0 : index
    %c0_7 = arith.constant 0 : index
    %8 = vector.load %arg4[%c0_6, %c0_7] : memref<32x64xf32, #tpu.memory_space<vmem>>, vector<32x64xf32>
    %c0_8 = arith.constant 0 : index
    %c0_9 = arith.constant 0 : index
    %9 = vector.load %arg5[%c0_8, %c0_9] : memref<32x1xf32, #tpu.memory_space<vmem>>, vector<32x1xf32>
    %cst_10 = arith.constant dense<0.000000e+00> : vector<32x128xf32>
    %10 = tpu.matmul %8, %7, %cst_10 {dimension_numbers = #tpu.dot_dimension_numbers<[1], [0], [0], [1], [0, 0, 1, 1], [], []>} : vector<32x64xf32>, vector<64x128xf32>, vector<32x128xf32> -> vector<32x128xf32>
    %11 = vector.broadcast %9 : vector<32x1xf32> to vector<32x128xf32>
    %12 = arith.addf %10, %11 : vector<32x128xf32>
    %cst_11 = arith.constant 0.000000e+00 : f32
    %13 = vector.broadcast %cst_11 : f32 to vector<32x128xf32>
    %14 = arith.maximumf %12, %13 : vector<32x128xf32>
    %c0_12 = arith.constant 0 : index
    %c0_13 = arith.constant 0 : index
    %15 = vector.load %arg6[%c0_12, %c0_13] : memref<32x1xf32, #tpu.memory_space<vmem>>, vector<32x1xf32>
    %c0_14 = arith.constant 0 : index
    %c0_15 = arith.constant 0 : index
    %16 = vector.load %arg7[%c0_14, %c0_15] : memref<1x1xf32, #tpu.memory_space<vmem>>, vector<1x1xf32>
    %17 = vector.broadcast %15 : vector<32x1xf32> to vector<32x128xf32>
    %18 = arith.mulf %14, %17 : vector<32x128xf32>
    %cst_16 = arith.constant dense<0.000000e+00> : vector<128xf32>
    %19 = vector.multi_reduction <add>, %18, %cst_16 [0] : vector<32x128xf32> to vector<128xf32>
    %20 = vector.shape_cast %19 : vector<128xf32> to vector<1x128xf32>
    %21 = vector.broadcast %16 : vector<1x1xf32> to vector<1x128xf32>
    %22 = arith.addf %20, %21 : vector<1x128xf32>
    %c0_17 = arith.constant 0 : index
    %c0_18 = arith.constant 0 : index
    %23 = vector.load %arg8[%c0_17, %c0_18] : memref<1x128xf32, #tpu.memory_space<vmem>>, vector<1x128xf32>
    tpu.vector_store %arg8[%c0_17, %c0_18], %22 {strides = array<i32>} : memref<1x128xf32, #tpu.memory_space<vmem>>, vector<1x128xf32>,
    return
  }
  func.func @transform_0(%arg0: i32) -> (i32, i32) {
    %c0_i32 = arith.constant 0 : i32
    %c0_i32_0 = arith.constant 0 : i32
    return %c0_i32, %arg0 : i32, i32
  }
  func.func @transform_1(%arg0: i32) -> (i32, i32) {
    %c0_i32 = arith.constant 0 : i32
    %c0_i32_0 = arith.constant 0 : i32
    %c0_i32_1 = arith.constant 0 : i32
    return %c0_i32, %c0_i32_0 : i32, i32
  }
  func.func @transform_2(%arg0: i32) -> (i32, i32) {
    %c0_i32 = arith.constant 0 : i32
    %c0_i32_0 = arith.constant 0 : i32
    %c0_i32_1 = arith.constant 0 : i32
    return %c0_i32, %c0_i32_0 : i32, i32
  }
  func.func @transform_3(%arg0: i32) -> (i32, i32) {
    %c0_i32 = arith.constant 0 : i32
    %c0_i32_0 = arith.constant 0 : i32
    %c0_i32_1 = arith.constant 0 : i32
    return %c0_i32, %c0_i32_0 : i32, i32
  }
  func.func @transform_4(%arg0: i32) -> (i32, i32) {
    %c0_i32 = arith.constant 0 : i32
    %c0_i32_0 = arith.constant 0 : i32
    %c0_i32_1 = arith.constant 0 : i32
    return %c0_i32, %c0_i32_0 : i32, i32
  }
  func.func @transform_5(%arg0: i32) -> (i32, i32) {
    %c0_i32 = arith.constant 0 : i32
    %c0_i32_0 = arith.constant 0 : i32
    %c0_i32_1 = arith.constant 0 : i32
    return %c0_i32, %c0_i32_0 : i32, i32
  }
  func.func @transform_6(%arg0: i32) -> (i32, i32) {
    %c0_i32 = arith.constant 0 : i32
    %c0_i32_0 = arith.constant 0 : i32
    %c0_i32_1 = arith.constant 0 : i32
    return %c0_i32, %c0_i32_0 : i32, i32
  }
  func.func @transform_7(%arg0: i32) -> (i32, i32) {
    %c0_i32 = arith.constant 0 : i32
    %c0_i32_0 = arith.constant 0 : i32
    return %c0_i32, %arg0 : i32, i32
  }
}

</mosaic_0001>

<bundles_post_ra>
// kernel: mlp_forward.1
= control target key start
LH: loop header
LB: loop body
LE: loop exit
PB: predicated region body
PF: predicated region fallthrough
CT: control target
= control target key end

     0   :  { %s1087_s0 = inlined_call_operand.vmem [shape: f32[32,384], index: 0, kind: input, shape index: {}]   ;;  %s1088_s1 = inlined_call_operand.vmem [shape: f32[64,32], index: 1, kind: input, shape index: {}]   ;;  %s1089_s2 = inlined_call_operand.vmem [shape: f32[64,1], index: 2, kind: input, shape index: {}]   ;;  %s1090_s3 = inlined_call_operand.vmem [shape: f32[32,64], index: 3, kind: input, shape index: {}]   ;;  %s1091_s4 = inlined_call_operand.vmem [shape: f32[32,1], index: 4, kind: input, shape index: {}]   ;;  %s1092_s5 = inlined_call_operand.vmem [shape: f32[32,1], index: 5, kind: input, shape index: {}]   ;;  %s1093_s6 = inlined_call_operand.<no memory space> [shape: f32[1,1], index: 6, kind: input, shape index: {}]   ;;  %s1094_s7 = inlined_call_operand.vmem [shape: f32[1,384], index: 7, kind: output, shape index: {}]  }
   0x1   :  { %v12_v0 = vstv %s1093_s6 }
   0x2   :  { %13 = vst [vmem:[#allocation2] sm:$0x1] %v12_v0 }
   0x3   :  { %s937_s26 = smov 0   ;;  %s939_s27 = smov 0  }
   0x4   :  { %s941_s28 = smov 0  }
   0x5 LB: > { %s754_s6 = sadd.s32 4294967295, %s891_s28   ;;  %s954_s29 = sadd.s32 1, %s891_s28   ;;  %s891_s28 = sphi %s941_s28, %s1097_s28   ;;  %s887_s27 = sphi %s939_s27, %s1096_s27   ;;  %s883_s26 = sphi %s937_s26, %s1095_s26  }
   0x6   : > { %s23_s30 = ssub.s32 %s891_s28, %s954_s29  ;;  %s26_s8 = sadd.s32 1, %s887_s27 }
   0x7   : > { %p24_p0 = scmp.eq.s32.totalorder %s23_s30, 0  ;;  %p33_p1 = scmp.ne.s32.totalorder %s887_s27, %s883_s26 }
   0x8   : > { %p34_p2 = scmp.eq.s32.totalorder %s891_s28, 0  ;;  %p757_p4 = scmp.ge.s32.totalorder %s891_s28, 3 }
   0x9   : > { %s963_s9 = scalar_select %p24_p0, %s887_s27, %s26_s8  }
   0xa   : > { %p35_p3 = por %p34_p2, %p33_p1  ;;  %229 = sbr.rel (%p757_p4) target bundleno = 21 (0x15), region = 40 }
   0xf   : > { %232 = sbr.rel (!%p35_p3) target bundleno = 21 (0x15), region = 44  ;;  %s234_s10 = sand.u32 (%p35_p3), 1, %s887_s27  }
  0x10   : > { %s759_s11 = sshll.u32 (%p35_p3), %s891_s28, 3  ;;  %s758_s12 = sshll.u32 (%p35_p3), %s234_s10, 5 }
  0x11   : > { %s238_s15 = scalar_lea.vmem (%p35_p3), %s1087_s0, %s759_s11  ;;  %s236_s16 = scalar_lea.vmem (%p35_p3), [#allocation3], %s758_s12 }
  0x12   : > { %v273_v1 = vld [vmem:[%s238_s15] sm:$0xff] (%p35_p3)  ;;  %v275_v2 = vld [vmem:[%s238_s15 + $0x18] sm:$0xff] (%p35_p3)  ;;  %v277_v3 = vld [vmem:[%s238_s15 + $0x30] sm:$0xff] (%p35_p3) }
  0x13   : > { %274 = vst [vmem:[%s236_s16] sm:$0xff] (%p35_p3), %v273_v1  ;;  %276 = vst [vmem:[%s236_s16 + $0x8] sm:$0xff] (%p35_p3), %v275_v2  ;;  %v279_v4 = vld [vmem:[%s238_s15 + $0x48] sm:$0xff] (%p35_p3) }
  0x14   : > { %278 = vst [vmem:[%s236_s16 + $0x10] sm:$0xff] %v277_v3  ;;  %280 = vst [vmem:[%s236_s16 + $0x18] sm:$0xff] %v279_v4 }
  0x15 PF: > { %p760_p5 = scmp.ge.s32.totalorder %s891_s28, 1  ;;  %p285_p6 = scmp.lt.s32.totalorder %s891_s28, 4 }
  0x17   : > { %p286_p7 = pnand %p760_p5, %p285_p6 }
  0x18   : > { %s292_s17 = sand.u32 (!%p286_p7), 1, %s883_s26   ;;  %p321_p8 = scmp.lt.s32.totalorder (!%p286_p7), %s754_s6, 2 }
  0x19   : > { %289 = sbr.rel (%p286_p7) target bundleno = 490 (0x1ea), region = 82  ;;  %s761_s20 = sshll.u32 (!%p286_p7), %s292_s17, 5 }
  0x1a   : > { %s294_s23 = scalar_lea.vmem (!%p286_p7), [#allocation3], %s761_s20 }
  0x1e   : > { %v328_v5 = vld [vmem:[%s1088_s1] sm:$0xff]  ;;  %vm384_vm0 = vcmask 261120   ;;  %v893_v6 = vmov 0   ;;  %v343_v7 = vld [vmem:[%s1089_s2 + $0x38] sm:$0xff]  ;;  %v342_v10 = vld [vmem:[%s1089_s2 + $0x30] sm:$0xff]  ;;  %vm550_vm1 = vcmask 523264  }
  0x1f   : > { %808 = vmatprep.mubr.msk.f32.mxu0 %vm384_vm0, %v328_v5  ;;  %867 = vset.pattern.permute.xlu0 %v893_v6  ;;  %v327_v8 = vld [vmem:[%s294_s23 + $0x18] sm:$0xff]  ;;  %v326_v9 = vld [vmem:[%s294_s23 + $0x10] sm:$0xff]  ;;  %v341_v11 = vld [vmem:[%s1089_s2 + $0x28] sm:$0xff]  ;;  %s1099_s6 = smov (!%p321_p8, %s754_s6), 2 }
  0x20   : > { %868 = vset.pattern.permute.xlu1 %v893_v6  ;;  %381 = vperm.xlu0 %867, %v343_v7   ;;  %v325_v12 = vld [vmem:[%s294_s23 + $0x8] sm:$0xff]  ;;  %v340_v13 = vld [vmem:[%s1089_s2 + $0x20] sm:$0xff]  ;;  %v339_v15 = vld [vmem:[%s1089_s2 + $0x18] sm:$0xff]  ;;  %s323_s21 = scalar_lea.vmem %s1094_s7, %s1099_s6 }
  0x21   : > { %800 = vmatprep.subr.mxu0 %v327_v8  ;;  %371 = vperm.xlu1 %868, %v341_v11   ;;  %v324_v14 = vld [vmem:[%s294_s23] sm:$0xff]  ;;  %v330_v17 = vld [vmem:[%s1088_s1 + $0x10] sm:$0xff]  ;;  %v331_v20 = vld [vmem:[%s1088_s1 + $0x18] sm:$0xff] }
  0x22   : > { %801 = vmatpush3.msra.mxu0 %v327_v8  ;;  %v329_v16 = vld [vmem:[%s1088_s1 + $0x8] sm:$0xff]  ;;  %v338_v18 = vld [vmem:[%s1089_s2 + $0x10] sm:$0xff]  ;;  %v332_v21 = vld [vmem:[%s1088_s1 + $0x20] sm:$0xff] }
  0x23   : > { %802 = vmatprep.subr.mxu0 %v326_v9  ;;  %v337_v19 = vld [vmem:[%s1089_s2 + $0x8] sm:$0xff]  ;;  %v336_v22 = vld [vmem:[%s1089_s2] sm:$0xff]  ;;  %v334_v25 = vld [vmem:[%s1088_s1 + $0x30] sm:$0xff] }
  0x24   : > { %803 = vmatpush3.msra.mxu0 %v326_v9  ;;  %376 = vperm.xlu0 %867, %v342_v10   ;;  %v526_v23 = vld [vmem:[%s1091_s4] sm:$0xff]  ;;  %v333_v24 = vld [vmem:[%s1088_s1 + $0x28] sm:$0xff]  ;;  %v528_v27 = vld [vmem:[%s1091_s4 + $0x10] sm:$0xff] }
  0x25   : > { %804 = vmatprep.subr.mxu0 %v325_v12  ;;  %366 = vperm.xlu1 %868, %v340_v13   ;;  %v527_v26 = vld [vmem:[%s1091_s4 + $0x8] sm:$0xff]  ;;  %v335_v28 = vld [vmem:[%s1088_s1 + $0x38] sm:$0xff]  ;;  %v652_v30 = vld [vmem:[%s1092_s5] sm:$0xff] }
  0x26   : > { %805 = vmatpush3.msra.mxu0 %v325_v12  ;;  %v529_v29 = vld [vmem:[%s1091_s4 + $0x18] sm:$0xff]  ;;  %v653_v31 = vld [vmem:[%s1092_s5 + $0x8] sm:$0xff]  ;;  %v654_v32 = vld [vmem:[%s1092_s5 + $0x10] sm:$0xff] }
  0x27   : > { %806 = vmatprep.subr.mxu0 %v324_v14  ;;  %v655_v33 = vld [vmem:[%s1092_s5 + $0x18] sm:$0xff]  ;;  %v656_v34 = vld [vmem:[#allocation2] sm:$0x1]  ;;  %v523_v4 = vld [vmem:[%s1090_s3 + $0x8] sm:$0xff] }
  0x28   : > { %807 = vmatpush3.msra.mxu0 %v324_v14  ;;  %361 = vperm.xlu0 %867, %v339_v15   ;;  %v522_v35 = vld [vmem:[%s1090_s3] sm:$0xff]  ;;  %v524_v5 = vld [vmem:[%s1090_s3 + $0x10] sm:$0xff]  ;;  %v525_v6 = vld [vmem:[%s1090_s3 + $0x18] sm:$0xff] }
  0x29   : > { %809 = vmatmul.mubr.msk.f32.vlgmr.msra.gmra.mxu0 %vm384_vm0, %v329_v16  ;;  %356 = vperm.xlu1 %868, %v338_v18  }
  0x2a   : > { %811 = vmatprep.mubr.msk.f32.mxu0 %vm384_vm0, %v330_v17  ;;  %836 = vmatprep.mubr.msk.f32.mxu1 %vm550_vm1, %v522_v35 }
  0x2c   : > { %351 = vperm.xlu0 %867, %v337_v19  }
  0x2d   : > { %812 = vmatmul.mubr.msk.f32.gmra.mxu0 %vm384_vm0, %v331_v20  ;;  %346 = vperm.xlu1 %868, %v336_v22  }
  0x2e   : > { %814 = vmatprep.mubr.msk.f32.mxu0 %vm384_vm0, %v332_v21 }
  0x30   : > { %532 = vperm.xlu0 %867, %v526_v23  }
  0x31   : > { %815 = vmatmul.mubr.msk.f32.gmra.mxu0 %vm384_vm0, %v333_v24  ;;  %537 = vperm.xlu1 %868, %v527_v26  }
  0x32   : > { %817 = vmatprep.mubr.msk.f32.mxu0 %vm384_vm0, %v334_v25 }
  0x34   : > { %542 = vperm.xlu0 %867, %v528_v27  }
  0x35   : > { %818 = vmatmul.mubr.msk.f32.gmra.mxu0 %vm384_vm0, %v335_v28  ;;  %547 = vperm.xlu1 %868, %v529_v29  }
  0x38   : > { %659 = vperm.xlu0 %867, %v652_v30  }
  0x39   : > { %664 = vperm.xlu1 %868, %v653_v31  }
  0x3c   : > { %669 = vperm.xlu0 %867, %v654_v32  }
  0x3d   : > { %674 = vperm.xlu1 %868, %v655_v33   ;;  %v695_v33 = vlaneseq }
  0x40   : > { %692 = vperm.xlu0 %867, %v656_v34  }
  0x9b   : > { %v382_v38 = vpop.permute.xlu0 %381 }
  0x9c   : > { %v372_v40 = vpop.permute.xlu1 %371 }
  0x9f   : > { %v377_v43 = vpop.permute.xlu0 %376 }
  0xa0   : > { %v367_v45 = vpop.permute.xlu1 %366 }
  0xa3   : > { %v362_v52 = vpop.permute.xlu0 %361 }
  0xa4   : > { %v357_v55 = vpop.permute.xlu1 %356 }
  0xa7   : > { %v352_v60 = vpop.permute.xlu0 %351 }
  0xa8   : > { %v347_v63 = vpop.permute.xlu1 %346 }
  0xab   : > { %v533_v7 = vpop.permute.xlu0 %532 }
  0xac   : > { %v538_v8 = vpop.permute.xlu1 %537 }
  0xaf   : > { %v543_v9 = vpop.permute.xlu0 %542 }
  0xb0   : > { %v548_v10 = vpop.permute.xlu1 %547 }
  0xb3   : > { %v660_v15 = vpop.permute.xlu0 %659 }
  0xb4   : > { %v665_v20 = vpop.permute.xlu1 %664 }
  0xb7   : > { %v670_v27 = vpop.permute.xlu0 %669 }
  0xb8   : > { %v675_v30 = vpop.permute.xlu1 %674 }
  0xe9   : > { %v810_v36 = vpop.f32.mrf.mxu0 }
  0xea   : > { %v481_v61 = vadd.f32 %v810_v36, %v352_v60  ;;  %v696_v36 = vshrl.u32 %v695_v33, 7 }
  0xeb   : > { %v475_v37 = vpop.f32.mrf.mxu0 }
  0xec   : > { %v476_v0 = vadd.f32 %v475_v37, %v347_v63  ;;  %v515_v2 = vmax.f32 %v481_v61, 0.0 }
  0xed   : > { %v813_v39 = vpop.f32.mrf.mxu0 }
  0xee   : > { %v491_v56 = vadd.f32 %v813_v39, %v362_v52  ;;  %v514_v3 = vmax.f32 %v476_v0, 0.0  ;;  %v697_v39 = vsub.s32 0, %v696_v36 }
  0xef   : > { %v485_v41 = vpop.f32.mrf.mxu0 }
  0xf0   : > { %v486_v58 = vadd.f32 %v485_v41, %v357_v55  ;;  %v517_v62 = vmax.f32 %v491_v56, 0.0  ;;  %v693_v41 = vpop.permute.xlu0 %692 }
  0xf1   : > { %v816_v42 = vpop.f32.mrf.mxu0 }
  0xf2   : > { %v501_v49 = vadd.f32 %v816_v42, %v372_v40  ;;  %v516_v1 = vmax.f32 %v486_v58, 0.0 }
  0xf3   : > { %v495_v44 = vpop.f32.mrf.mxu0 }
  0xf4   : > { %v496_v53 = vadd.f32 %v495_v44, %v367_v45  ;;  %v519_v57 = vmax.f32 %v501_v49, 0.0 }
  0xf5   : > { %v819_v46 = vpop.f32.mrf.mxu0 }
  0xf6   : > { %v511_v47 = vadd.f32 %v819_v46, %v382_v38  ;;  %v518_v59 = vmax.f32 %v496_v53, 0.0 }
  0xf7   : > { %v505_v48 = vpop.f32.mrf.mxu0 }
  0xf8   : > { %v521_v50 = vmax.f32 %v511_v47, 0.0  ;;  %v506_v51 = vadd.f32 %v505_v48, %v377_v43  ;;  %v698_v43 = vrot.slane %v693_v41, %v697_v39 }
  0xfa   : > { %v520_v54 = vmax.f32 %v506_v51, 0.0  ;;  %820 = vmatprep.subr.mxu1 %v521_v50 }
  0xfb   : > { %821 = vmatpush3.msra.mxu1 %v521_v50 }
  0xfc   : > { %822 = vmatprep.subr.mxu1 %v520_v54 }
  0xfd   : > { %823 = vmatpush3.msra.mxu1 %v520_v54 }
  0xfe   : > { %824 = vmatprep.subr.mxu1 %v519_v57 }
  0xff   : > { %825 = vmatpush3.msra.mxu1 %v519_v57 }
 0x100   : > { %826 = vmatprep.subr.mxu1 %v518_v59 }
 0x101   : > { %827 = vmatpush3.msra.mxu1 %v518_v59 }
 0x102   : > { %828 = vmatprep.subr.mxu1 %v517_v62 }
 0x103   : > { %829 = vmatpush3.msra.mxu1 %v517_v62 }
 0x104   : > { %830 = vmatprep.subr.mxu1 %v516_v1 }
 0x105   : > { %831 = vmatpush3.msra.mxu1 %v516_v1 }
 0x106   : > { %832 = vmatprep.subr.mxu1 %v515_v2 }
 0x107   : > { %833 = vmatpush3.msra.mxu1 %v515_v2 }
 0x108   : > { %834 = vmatprep.subr.mxu1 %v514_v3 }
 0x109   : > { %835 = vmatpush3.msra.mxu1 %v514_v3 }
 0x10a   : > { %837 = vmatmul.mubr.msk.f32.vlgmr.msra.gmra.mxu1 %vm550_vm1, %v523_v4 }
 0x10b   : > { %839 = vmatprep.mubr.msk.f32.mxu1 %vm550_vm1, %v524_v5 }
 0x10e   : > { %840 = vmatmul.mubr.msk.f32.gmra.mxu1 %vm550_vm1, %v525_v6 }
 0x1ca   : > { %v838_v11 = vpop.f32.mrf.mxu1 }
 0x1cb   : > { %v635_v12 = vadd.f32 %v838_v11, %v538_v8 }
 0x1cc   : > { %v629_v13 = vpop.f32.mrf.mxu1 }
 0x1cd   : > { %v630_v14 = vadd.f32 %v629_v13, %v533_v7  ;;  %v649_v17 = vmax.f32 %v635_v12, 0.0 }
 0x1ce   : > { %v841_v16 = vpop.f32.mrf.mxu1 }
 0x1cf   : > { %v648_v18 = vmax.f32 %v630_v14, 0.0  ;;  %v645_v19 = vadd.f32 %v841_v16, %v548_v10  ;;  %v678_v24 = vmul.f32 %v665_v20, %v649_v17 }
 0x1d0   : > { %v639_v21 = vpop.f32.mrf.mxu1 }
 0x1d1   : > { %v677_v22 = vmul.f32 %v660_v15, %v648_v18  ;;  %v640_v23 = vadd.f32 %v639_v21, %v543_v9  ;;  %v651_v25 = vmax.f32 %v645_v19, 0.0 }
 0x1d3   : > { %v650_v26 = vmax.f32 %v640_v23, 0.0  ;;  %v681_v28 = vadd.f32 %v678_v24, %v677_v22  ;;  %v680_v31 = vmul.f32 %v675_v30, %v651_v25 }
 0x1d5   : > { %v679_v29 = vmul.f32 %v670_v27, %v650_v26 }
 0x1d7   : > { %v682_v32 = vadd.f32 %v681_v28, %v679_v29 }
 0x1d9   : > { %v683_v34 = vadd.f32 %v682_v32, %v680_v31 }
 0x1db   : > { %v684_v35 = vrot.slane %v683_v34, 4 }
 0x1dd   : > { %v685_v37 = vadd.f32 %v684_v35, %v683_v34 }
 0x1df   : > { %v686_v38 = vrot.slane %v685_v37, 2 }
 0x1e1   : > { %v687_v40 = vadd.f32 %v686_v38, %v685_v37 }
 0x1e3   : > { %v688_v42 = vrot.slane %v687_v40, 1 }
 0x1e5   : > { %v689_v44 = vadd.f32 %v688_v42, %v687_v40 }
 0x1e7   : > { %v699_v45 = vadd.f32 %v698_v43, %v689_v44 }
 0x1e9   : > { %700 = vst [vmem:[%s323_s21] sm:$0x1] %v699_v45 }
 0x1ea PF: > { %p16_p9 = scmp.ge.s32.totalorder %s954_s29, 5   ;;  %s1095_s26 = smov %s887_s27 }
 0x1eb   : > { %s1096_s27 = smov %s963_s9  ;;  %s1097_s28 = smov %s954_s29 }
 0x1ec   :  { %18 = sbr.rel (!%p16_p9) target bundleno = 5 (0x5), region = 121 }

</bundles_post_ra>
